<compile_context>
chip_gen: v7x
topology: tpu7x:2x2x1
jax: 0.10.0
libtpu: 0.0.40
codegen_flags: <defaults>
</compile_context>

<pallas_src>
import math

import jax
import jax.numpy as jnp
from jax.experimental import pallas as pl
from jax.experimental.pallas import tpu as pltpu


def _round_up(x, m):
    return ((x + m - 1) // m) * m


def _vmem_capacity_bytes():
    """Physical per-core VMEM; conservative fallback is v7x's 64 MiB."""
    try:
        info = pltpu.get_tpu_info()
        cap = int(getattr(info, "vmem_capacity_bytes", 0))
        if cap > 0:
            return cap
    except Exception:
        pass
    return 64 * 1024 * 1024


def _silu_f32(h):
    # sigmoid = 1 / (1 + exp(-h)); exp and the approximate reciprocal both run
    # on the EUP slot, so the whole SiLU hides under the surrounding MXU work.
    return h * pl.reciprocal(1.0 + jnp.exp(-h), approx=True)


# --------------- resident path: whole W1 / W2 live in VMEM ------------------

def _mlp_resident_kernel(x_ref, w1_ref, b1_ref, w2_ref, b2_ref, o_ref):
    # x_ref: (tm, K)  w1_ref: (K, N)  b1_ref: (1, N)  w2_ref: (N, N)
    # b2_ref: (1, N)  o_ref: (tm, N)
    x = x_ref[...].astype(w1_ref.dtype)
    h = jnp.dot(x, w1_ref[...], preferred_element_type=jnp.float32)
    h = _silu_f32(h + b1_ref[...].astype(jnp.float32))
    out = jnp.dot(h.astype(w2_ref.dtype), w2_ref[...],
                  preferred_element_type=jnp.float32)
    o_ref[...] = (out + b2_ref[...].astype(jnp.float32)).astype(o_ref.dtype)


# --------------- streamed path: W2 tiled over output columns ----------------

def _mlp_streamed_kernel(x_ref, w1_ref, b1_ref, w2_ref, b2_ref, o_ref, h_ref):
    # x_ref : (tm, K)   w1_ref: (K, N)   b1_ref: (1, N)
    # w2_ref: (N, tn)   b2_ref: (1, tn)  o_ref : (tm, tn)
    # h_ref : (tm, N) scratch in the MXU dtype; computed once per row tile.
    j = pl.program_id(1)

    @pl.when(j == 0)
    def _():
        x = x_ref[...].astype(w1_ref.dtype)
        h = jnp.dot(x, w1_ref[...], preferred_element_type=jnp.float32)
        h = _silu_f32(h + b1_ref[...].astype(jnp.float32))
        h_ref[...] = h.astype(h_ref.dtype)

    out = jnp.dot(h_ref[...], w2_ref[...], preferred_element_type=jnp.float32)
    o_ref[...] = (out + b2_ref[...].astype(jnp.float32)).astype(o_ref.dtype)


def mlp_embedder(x, w1, b1, w2, b2, *, tm=None, tn=None, mode="auto"):
    """out_layer(silu(in_layer(x))).

    x : (..., in_dim)
    w1: (in_dim, embed_dim), b1: (embed_dim,)
    w2: (embed_dim, embed_dim), b2: (embed_dim,)
    Returns (..., embed_dim) in x.dtype.  Pass bf16 weights for peak MXU rate
    (accumulation stays f32).  mode: "auto" | "resident" | "stream".
    """
    in_dim = x.shape[-1]
    embed_dim = w1.shape[1]
    assert w1.shape == (in_dim, embed_dim)
    assert w2.shape == (embed_dim, embed_dim)
    assert b1.shape == (embed_dim,) and b2.shape == (embed_dim,)

    lead = x.shape[:-1]
    n_rows = max(1, math.prod(lead))

    x_bytes = jnp.dtype(x.dtype).itemsize
    w_bytes = jnp.dtype(w1.dtype).itemsize
    # hidden activation stored in the MXU/weight dtype when narrower than f32
    h_dtype = w1.dtype if w_bytes < 4 else jnp.float32
    h_bytes = jnp.dtype(h_dtype).itemsize

    # sublane packing of the activation dtype (8 f32 / 16 bf16 / 32 int8-fp8)
    sub = {1: 32, 2: 16, 4: 8}.get(x_bytes, 8)

    k_pad = _round_up(in_dim, 128)
    n_pad = _round_up(embed_dim, 128)

    budget = int(0.75 * _vmem_capacity_bytes())   # valid on v7x (64 MiB) too
    rows_ceil = _round_up(n_rows, sub)

    # Rough VMEM footprint of the resident path at row tile tm_:
    #   single-copy W1/W2/biases + double-buffered x & out blocks + f32 temps.
    def resident_cost(tm_):
        fixed = w_bytes * (k_pad * n_pad + n_pad * n_pad + 16 * n_pad)
        per_row = (2 * k_pad * x_bytes + 2 * n_pad * x_bytes
                   + n_pad * 4 + n_pad * w_bytes + n_pad * 4)
        return fixed + tm_ * per_row

    use_resident = mode != "stream" and (
        mode == "resident" or resident_cost(sub) <= budget)

    x2d = x.reshape(n_rows, in_dim)

    if use_resident:
        # ----------------------------- resident ----------------------------
        tm_des = tm if tm is not None else 256
        tm_eff = max(sub, _round_up(min(_round_up(tm_des, sub), rows_ceil), sub))
        while tm_eff > sub and resident_cost(tm_eff) > budget:
            tm_eff = max(sub, _round_up(tm_eff // 2, sub))
        # Small-batch case: split into >=2 row tiles so both v7x TensorCores
        # get work on the "parallel" row axis (harmless on 1-TC chips).
        if tm is None and rows_ceil <= tm_eff and rows_ceil >= 2 * sub:
            tm_eff = _round_up((rows_ceil + 1) // 2, sub)
        rows_pad = _round_up(n_rows, tm_eff)

        x2d = jnp.pad(x2d, ((0, rows_pad - n_rows), (0, k_pad - in_dim)))
        w1p = jnp.pad(w1, ((0, k_pad - in_dim), (0, n_pad - embed_dim)))
        w2p = jnp.pad(w2, ((0, n_pad - embed_dim), (0, n_pad - embed_dim)))
        b1p = jnp.pad(b1, (0, n_pad - embed_dim)).reshape(1, n_pad)
        b2p = jnp.pad(b2, (0, n_pad - embed_dim)).reshape(1, n_pad)

        # Whole-array VMEM specs: weights/biases are copied HBM->VMEM exactly
        # once (single buffer, no per-row-tile re-DMA).
        resident_spec = pl.BlockSpec(memory_space=pltpu.MemorySpace.VMEM)

        out2d = pl.pallas_call(
            _mlp_resident_kernel,
            out_shape=jax.ShapeDtypeStruct((rows_pad, n_pad), x.dtype),
            grid_spec=pltpu.PrefetchScalarGridSpec(
                num_scalar_prefetch=0,
                grid=(rows_pad // tm_eff,),
                in_specs=[
                    pl.BlockSpec((tm_eff, k_pad), lambda i: (i, 0)),
                    resident_spec,   # W1
                    resident_spec,   # b1
                    resident_spec,   # W2
                    resident_spec,   # b2
                ],
                out_specs=pl.BlockSpec((tm_eff, n_pad), lambda i: (i, 0)),
            ),
            compiler_params=pltpu.CompilerParams(
                dimension_semantics=("parallel",),
                vmem_limit_bytes=budget,
            ),
        )(x2d, w1p, b1p, w2p, b2p)

    else:
        # ----------------------------- streamed ----------------------------
        # Keep output-column tiles a multiple of 256 so the 2x256x256 MXU on
        # v6e/v7x runs at full lane utilization.
        if n_pad % 256 != 0:
            n_pad = _round_up(embed_dim, 256)
        if tn is None:
            tn_eff = 512 if n_pad % 512 == 0 else 256
        else:
            tn_eff = tn
        assert tn_eff % 128 == 0 and n_pad % tn_eff == 0

        def stream_cost(tm_):
            fixed = (w_bytes * (k_pad * n_pad + 8 * n_pad)            # W1+b1 resident
                     + 2 * w_bytes * (n_pad * tn_eff + 8 * tn_eff))   # W2/b2 blocks (2x buf)
            per_row = (2 * k_pad * x_bytes + 2 * tn_eff * x_bytes
                       + n_pad * h_bytes                              # h scratch
                       + n_pad * 4 + tn_eff * 4)                      # f32 matmul temps
            return fixed + tm_ * per_row

        # tm ~ 768 so the second matmul's flop/byte (~tm per W2 byte) clears
        # the v6e/v7x HBM roofline (~620-660); shrink only if VMEM forces it.
        tm_des = tm if tm is not None else 768
        tm_eff = max(sub, _round_up(min(_round_up(tm_des, sub), rows_ceil), sub))
        while tm_eff > sub and stream_cost(tm_eff) > budget:
            tm_eff = max(sub, _round_up(tm_eff // 2, sub))
        rows_pad = _round_up(n_rows, tm_eff)

        x2d = jnp.pad(x2d, ((0, rows_pad - n_rows), (0, k_pad - in_dim)))
        w1p = jnp.pad(w1, ((0, k_pad - in_dim), (0, n_pad - embed_dim)))
        w2p = jnp.pad(w2, ((0, n_pad - embed_dim), (0, n_pad - embed_dim)))
        b1p = jnp.pad(b1, (0, n_pad - embed_dim)).reshape(1, n_pad)
        b2p = jnp.pad(b2, (0, n_pad - embed_dim)).reshape(1, n_pad)

        resident_spec = pl.BlockSpec(memory_space=pltpu.MemorySpace.VMEM)

        # TODO(synk): if in_dim is also huge (W1 itself cannot sit in VMEM),
        # W1 would need streaming over hidden-column blocks at j==0; not
        # needed for the embed-dim sizes this module is used with.
        # TODO(synk): v7x-only fp8 weight path (per-tensor scale after the
        # f32-accumulated dot) would halve W2 traffic; gated on accuracy.
        out2d = pl.pallas_call(
            _mlp_streamed_kernel,
            out_shape=jax.ShapeDtypeStruct((rows_pad, n_pad), x.dtype),
            grid_spec=pltpu.PrefetchScalarGridSpec(
                num_scalar_prefetch=0,
                grid=(rows_pad // tm_eff, n_pad // tn_eff),
                in_specs=[
                    pl.BlockSpec((tm_eff, k_pad), lambda i, j: (i, 0)),
                    resident_spec,                                   # W1
                    resident_spec,                                   # b1
                    pl.BlockSpec((n_pad, tn_eff), lambda i, j: (0, j)),
                    pl.BlockSpec((1, tn_eff), lambda i, j: (0, j)),
                ],
                out_specs=pl.BlockSpec((tm_eff, tn_eff), lambda i, j: (i, j)),
                scratch_shapes=[pltpu.VMEM((tm_eff, n_pad), h_dtype)],
            ),
            compiler_params=pltpu.CompilerParams(
                dimension_semantics=("parallel", "arbitrary"),
                vmem_limit_bytes=budget,
            ),
        )(x2d, w1p, b1p, w2p, b2p)

    out2d = out2d[:n_rows, :embed_dim]
    return out2d.reshape(*lead, embed_dim)


if __name__ == "__main__":
    key = jax.random.PRNGKey(0)
    batch, seq, in_dim, embed_dim = 2, 8, 16, 32

    k_x, k_w1, k_b1, k_w2, k_b2 = jax.random.split(key, 5)
    x = jax.random.normal(k_x, (batch, seq, in_dim), dtype=jnp.float32)

    # Deterministic synthetic parameter init (stands in for init_linear).
    w1 = jax.random.normal(k_w1, (in_dim, embed_dim), dtype=jnp.float32) * 0.02
    b1 = jax.random.normal(k_b1, (embed_dim,), dtype=jnp.float32) * 0.02
    w2 = jax.random.normal(k_w2, (embed_dim, embed_dim), dtype=jnp.float32) * 0.02
    b2 = jax.random.normal(k_b2, (embed_dim,), dtype=jnp.float32) * 0.02

    # Pure-JAX reference of the forward semantics.
    h_ref = x @ w1 + b1
    h_ref = h_ref * jax.nn.sigmoid(h_ref)
    out_ref = h_ref @ w2 + b2

    # f32 weights, auto (resident / fused) path.  Tolerance accounts for the
    # EUP approximate-reciprocal sigmoid.
    out = jax.block_until_ready(mlp_embedder(x, w1, b1, w2, b2))
    assert out.shape == (batch, seq, embed_dim)
    assert jnp.allclose(out, out_ref, atol=1e-3, rtol=1e-2)

    # Forced streamed-W2 path (covers the large-embed_dim kernel too).
    out_s = jax.block_until_ready(mlp_embedder(x, w1, b1, w2, b2, mode="stream"))
    assert out_s.shape == (batch, seq, embed_dim)
    assert jnp.allclose(out_s, out_ref, atol=1e-3, rtol=1e-2)

    # bf16 weights (MXU fast path, f32 accumulation): relaxed check.
    out_bf16 = jax.block_until_ready(
        mlp_embedder(
            x,
            w1.astype(jnp.bfloat16), b1.astype(jnp.bfloat16),
            w2.astype(jnp.bfloat16), b2.astype(jnp.bfloat16),
        )
    )
    assert out_bf16.shape == (batch, seq, embed_dim)
    assert jnp.allclose(out_bf16, out_ref, atol=1e-2, rtol=5e-2)

    print("KERNEL_OK")
</pallas_src>

<mosaic_0001>
module attributes {stable_mosaic.version = 11 : i64} {
  func.func @_mlp_resident_kernel(%arg0: i32, %arg1: memref<8x128xf32, #tpu.memory_space<vmem>>, %arg2: memref<128x128xf32, #tpu.memory_space<vmem>>, %arg3: memref<1x128xf32, #tpu.memory_space<vmem>>, %arg4: memref<128x128xf32, #tpu.memory_space<vmem>>, %arg5: memref<1x128xf32, #tpu.memory_space<vmem>>, %arg6: memref<8x128xf32, #tpu.memory_space<vmem>>) attributes {dimension_semantics = [#tpu.dimension_semantics<parallel>], iteration_bounds = array<i64: 2>, scalar_prefetch = 0 : i64, scratch_operands = 0 : i64, tpu.core_type = #tpu.core_type<tc>, window_params = [{transform_indices = @transform_0, window_bounds = array<i64: 8, 128>}, {pipeline_mode = #tpu.pipeline_mode<synchronous>, transform_indices = @transform_1, window_bounds = array<i64: 128, 128>}, {pipeline_mode = #tpu.pipeline_mode<synchronous>, transform_indices = @transform_2, window_bounds = array<i64: 1, 128>}, {pipeline_mode = #tpu.pipeline_mode<synchronous>, transform_indices = @transform_3, window_bounds = array<i64: 128, 128>}, {pipeline_mode = #tpu.pipeline_mode<synchronous>, transform_indices = @transform_4, window_bounds = array<i64: 1, 128>}, {transform_indices = @transform_5, window_bounds = array<i64: 8, 128>}]} {
    %c0 = arith.constant 0 : index
    %c0_0 = arith.constant 0 : index
    %0 = vector.load %arg1[%c0, %c0_0] : memref<8x128xf32, #tpu.memory_space<vmem>>, vector<8x128xf32>
    %c0_1 = arith.constant 0 : index
    %c0_2 = arith.constant 0 : index
    %1 = vector.load %arg2[%c0_1, %c0_2] : memref<128x128xf32, #tpu.memory_space<vmem>>, vector<128x128xf32>
    %cst = arith.constant dense<0.000000e+00> : vector<8x128xf32>
    %2 = tpu.matmul %0, %1, %cst {dimension_numbers = #tpu.dot_dimension_numbers<[1], [0], [0], [1], [0, 0, 1, 1], [], []>} : vector<8x128xf32>, vector<128x128xf32>, vector<8x128xf32> -> vector<8x128xf32>
    %c0_3 = arith.constant 0 : index
    %c0_4 = arith.constant 0 : index
    %3 = vector.load %arg3[%c0_3, %c0_4] : memref<1x128xf32, #tpu.memory_space<vmem>>, vector<1x128xf32>
    %4 = vector.broadcast %3 : vector<1x128xf32> to vector<8x128xf32>
    %5 = arith.addf %2, %4 : vector<8x128xf32>
    %cst_5 = arith.constant 0.000000e+00 : f32
    %6 = vector.broadcast %cst_5 : f32 to vector<8x128xf32>
    %7 = arith.subf %6, %5 : vector<8x128xf32>
    %8 = math.exp %7 : vector<8x128xf32>
    %cst_6 = arith.constant 1.000000e+00 : f32
    %9 = vector.broadcast %cst_6 : f32 to vector<8x128xf32>
    %10 = arith.addf %9, %8 : vector<8x128xf32>
    %11 = tpu.reciprocal %10 {approx = true} : vector<8x128xf32> -> vector<8x128xf32>
    %12 = arith.mulf %5, %11 : vector<8x128xf32>
    %c0_7 = arith.constant 0 : index
    %c0_8 = arith.constant 0 : index
    %13 = vector.load %arg4[%c0_7, %c0_8] : memref<128x128xf32, #tpu.memory_space<vmem>>, vector<128x128xf32>
    %cst_9 = arith.constant dense<0.000000e+00> : vector<8x128xf32>
    %14 = tpu.matmul %12, %13, %cst_9 {dimension_numbers = #tpu.dot_dimension_numbers<[1], [0], [0], [1], [0, 0, 1, 1], [], []>} : vector<8x128xf32>, vector<128x128xf32>, vector<8x128xf32> -> vector<8x128xf32>
    %c0_10 = arith.constant 0 : index
    %c0_11 = arith.constant 0 : index
    %15 = vector.load %arg5[%c0_10, %c0_11] : memref<1x128xf32, #tpu.memory_space<vmem>>, vector<1x128xf32>
    %16 = vector.broadcast %15 : vector<1x128xf32> to vector<8x128xf32>
    %17 = arith.addf %14, %16 : vector<8x128xf32>
    %c0_12 = arith.constant 0 : index
    %c0_13 = arith.constant 0 : index
    %18 = vector.load %arg6[%c0_12, %c0_13] : memref<8x128xf32, #tpu.memory_space<vmem>>, vector<8x128xf32>
    tpu.vector_store %arg6[%c0_12, %c0_13], %17 {strides = array<i32>} : memref<8x128xf32, #tpu.memory_space<vmem>>, vector<8x128xf32>,
    return
  }
  func.func @transform_0(%arg0: i32) -> (i32, i32) {
    %c0_i32 = arith.constant 0 : i32
    %c0_i32_0 = arith.constant 0 : i32
    return %arg0, %c0_i32 : i32, i32
  }
  func.func @transform_1(%arg0: i32) -> (i32, i32) {
    %c0_i32 = arith.constant 0 : i32
    %c0_i32_0 = arith.constant 0 : i32
    %c0_i32_1 = arith.constant 0 : i32
    return %c0_i32, %c0_i32_0 : i32, i32
  }
  func.func @transform_2(%arg0: i32) -> (i32, i32) {
    %c0_i32 = arith.constant 0 : i32
    %c0_i32_0 = arith.constant 0 : i32
    %c0_i32_1 = arith.constant 0 : i32
    return %c0_i32, %c0_i32_0 : i32, i32
  }
  func.func @transform_3(%arg0: i32) -> (i32, i32) {
    %c0_i32 = arith.constant 0 : i32
    %c0_i32_0 = arith.constant 0 : i32
    %c0_i32_1 = arith.constant 0 : i32
    return %c0_i32, %c0_i32_0 : i32, i32
  }
  func.func @transform_4(%arg0: i32) -> (i32, i32) {
    %c0_i32 = arith.constant 0 : i32
    %c0_i32_0 = arith.constant 0 : i32
    %c0_i32_1 = arith.constant 0 : i32
    return %c0_i32, %c0_i32_0 : i32, i32
  }
  func.func @transform_5(%arg0: i32) -> (i32, i32) {
    %c0_i32 = arith.constant 0 : i32
    %c0_i32_0 = arith.constant 0 : i32
    return %arg0, %c0_i32 : i32, i32
  }
}

</mosaic_0001>

<bundles_post_ra>
// kernel: tpu_custom_call.1
= control target key start
LH: loop header
LB: loop body
LE: loop exit
PB: predicated region body
PF: predicated region fallthrough
CT: control target
= control target key end

     0   :  { %10 = vsyncpa [#allocation3], 0  ;;  %s1267_s0 = inlined_call_operand.hbm [shape: f32[16,128], index: 0, kind: input, shape index: {}]   ;;  %s1268_s1 = inlined_call_operand.hbm [shape: f32[128,128], index: 1, kind: input, shape index: {}]   ;;  %s1269_s2 = inlined_call_operand.vmem [shape: f32[1,128], index: 2, kind: input, shape index: {}]   ;;  %s1270_s3 = inlined_call_operand.hbm [shape: f32[128,128], index: 3, kind: input, shape index: {}]   ;;  %s1271_s4 = inlined_call_operand.vmem [shape: f32[1,128], index: 4, kind: input, shape index: {}]   ;;  %s1272_s5 = inlined_call_operand.hbm [shape: f32[16,128], index: 5, kind: output, shape index: {}]  }
   0x1   :  { %12 = vsyncpa [#allocation3 + $0x1], 0 }
   0x2   :  { %13 = vsyncpa [#allocation6], 0 }
   0x3   :  { %14 = vsyncpa [#allocation4], 0 }
   0x4   :  { %16 = vsyncpa [#allocation4 + $0x1], 0  ;;  %s1009_s18 = smov 0   ;;  %s1011_s19 = smov 0  }
   0x5   :  { %s1013_s20 = smov 0   ;;  %s1015_s21 = smov 0  }
   0x6 LB: > { %s1030_s22 = sadd.s32 4294967295, %s968_s21   ;;  %s566_s23 = sadd.s32 4294967294, %s968_s21   ;;  %s968_s21 = sphi %s1015_s21, %s1292_s21   ;;  %s964_s20 = sphi %s1013_s20, %s1291_s20   ;;  %s960_s19 = sphi %s1011_s19, %s1290_s19   ;;  %s956_s18 = sphi %s1009_s18, %s1289_s18  }
   0x7   : > { %p42_p0 = scmp.ne.s32.totalorder %s960_s19, %s956_s18  ;;  %p1273_p1 = scmp.eq.s32.totalorder %s1030_s22, 0 }
   0x8   : > { %p156_p3 = scmp.eq.s32.totalorder %s566_s23, 1  ;;  %p567_p5 = scmp.ge.s32.totalorder %s968_s21, 1 }
   0x9   : > { %p1039_p4 = por %p1273_p1, %p42_p0  ;;  %p163_p7 = scmp.lt.s32.totalorder %s968_s21, 3 }
   0xa   : > { %p1044_p6 = por %p156_p3, %p42_p0  ;;  %s970_s27 = smov [#allocation5]  }
   0xb   : > { %s1276_s24 = scalar_select %p1039_p4, 1, 0 }
   0xc   : > { %s1277_s25 = scalar_select %p1044_p6, 1, 0 }
   0xd   : > { %p1049_p8 = pnand %p567_p5, %p163_p7  ;;  %s175_s28 = sshll.u32 %s970_s27, 4  ;;  %s1053_s28 = int_to_ptr.vmem [resolvable:$true] %s175_s28 }
   0xe   : > { %s971_s30 = smov [#allocation7]   ;;  %s812_s9 = scalar_lea.hbm %s1268_s1, 2048 }
   0xf   : > { %p748_p9 = pneg %p1049_p8  ;;  %s191_s6 = sshll.u32 %s971_s30, 4  ;;  %s1064_s6 = int_to_ptr.vmem [resolvable:$true] %s191_s6 }
  0x10   : > { %p813_p12 = scmp.ne.s32.totalorder %s1268_s1, %s812_s9  ;;  %p819_p5 = scmp.lt.u32.totalorder %s812_s9, %s1268_s1 }
  0x11   : > { %p1060_p11 = pnand %p748_p9, %p1273_p1 }
  0x13   : > { %p814_p13 = pneg %p1060_p11 }
  0x15   : > { %p815_p0 = pnand %p814_p13, %p813_p12 }
  0x17   : > { %p816_p3 = pneg %p815_p0 }
  0x19   : > { %p821_p7 = pnand %p819_p5, %p816_p3 }
  0x1b   : > { %824 = shalt.err (!%p821_p7)
}
  0x1c   : > { %s825_s14 = scalar_lea.vmem %s1053_s28, 2048  ;;  %p833_p2 = scmp.lt.s32.totalorder %s1053_s28, %s1053_s28 }
  0x1d   : > { %p826_p9 = scmp.ne.s32.totalorder %s1053_s28, %s825_s14  ;;  %p834_p12 = scmp.lt.s32.totalorder %s825_s14, %s825_s14 }
  0x1f   : > { %p828_p10 = pnand %p826_p9, %p814_p13  ;;  %p835_p0 = por %p834_p12, %p833_p2 }
  0x21   : > { %p829_p1 = pneg %p828_p10 }
  0x23   : > { %p836_p6 = pnand %p835_p0, %p829_p1 }
  0x25   : > { %839 = shalt.err (!%p836_p6)
}
  0x26   : > { %s972_s15 = smov 128   ;;  %s973_s16 = smov 8  }
  0x27   : > { %751 = dma.hbm_to_vmem [thread:$0]  (!%p1060_p11), %s1268_s1, 2048, %s1053_s28, [#allocation6], %s972_s15, %s972_s15, %s973_s16  }
  0x28   : > { %s840_s7 = scalar_lea.hbm %s1270_s3, 2048 }
  0x29   : > { %p841_p2 = scmp.ne.s32.totalorder %s1270_s3, %s840_s7  ;;  %p847_p10 = scmp.lt.u32.totalorder %s840_s7, %s1270_s3 }
  0x2b   : > { %p843_p1 = pnand %p841_p2, %p814_p13 }
  0x2d   : > { %p844_p6 = pneg %p843_p1 }
  0x2f   : > { %p849_p3 = pnand %p847_p10, %p844_p6 }
  0x31   : > { %852 = shalt.err (!%p849_p3)
}
  0x32   : > { %s853_s28 = scalar_lea.vmem %s1064_s6, 2048  ;;  %p861_p12 = scmp.lt.s32.totalorder %s1064_s6, %s1064_s6 }
  0x33   : > { %p854_p5 = scmp.ne.s32.totalorder %s1064_s6, %s853_s28  ;;  %p862_p0 = scmp.lt.s32.totalorder %s853_s28, %s853_s28 }
  0x35   : > { %p856_p7 = pnand %p854_p5, %p814_p13  ;;  %p863_p2 = por %p862_p0, %p861_p12 }
  0x37   : > { %p857_p9 = pneg %p856_p7 }
  0x39   : > { %p864_p1 = pnand %p863_p2, %p857_p9 }
  0x3b   : > { %867 = shalt.err (!%p864_p1)
}
  0x3c   : > { %754 = dma.hbm_to_vmem [thread:$0]  (!%p1060_p11), %s1270_s3, 2048, %s1064_s6, [#allocation6], %s972_s15, %s972_s15, %s973_s16  }
  0x3d   : > { %s1119_s14 = sadd.s32 1, %s968_s21   ;;  %s29_s29 = sadd.s32 1, %s964_s20 }
  0x3e   : > { %s26_s17 = ssub.s32 %s968_s21, %s1119_s14  ;;  %p36_p13 = scmp.ne.s32.totalorder %s964_s20, %s960_s19 }
  0x3f   : > { %p27_p6 = scmp.eq.s32.totalorder %s26_s17, 0  ;;  %p37_p10 = scmp.eq.s32.totalorder %s968_s21, 0 }
  0x40   : > { %p1280_p3 = scmp.eq.s32.totalorder %s1030_s22, 1  ;;  %p765_p7 = scmp.lt.s32.totalorder %s968_s21, 2 }
  0x41   : > { %s1135_s27 = scalar_select %p27_p6, %s964_s20, %s29_s29  }
  0x42   : > { %p1129_p5 = por %p1280_p3, %p36_p13  ;;  %p38_p9 = por %p37_p10, %p36_p13 }
  0x43   : > { %s208_s30 = sand.u32 1, %s964_s20   ;;  %s572_s6 = sshll.u32 %s968_s21, 7 }
  0x44   : > { %s1281_s23 = scalar_select %p1129_p5, 1, 0 }
  0x45   : > { %s571_s7 = sshll.u32 %s208_s30, 3  ;;  %s1142_s8 = scalar_lea.hbm %s1267_s0, %s572_s6 }
  0x46   : > { %s212_s9 = scalar_lea.vmem [#allocation2], %s571_s7  ;;  %p1146_p11 = pnand %p765_p7, %p38_p9 }
  0x47   : > { %s219_s10 = sshll.u32 %s212_s9, 4  ;;  %s209_s28 = scalar_lea.sflag [#allocation3], %s208_s30  ;;  %s1144_s10 = int_to_ptr.vmem [resolvable:$true] %s219_s10 }
  0x48   : > { %s868_s12 = scalar_lea.hbm %s1142_s8, 128  ;;  %p870_p0 = pneg %p1146_p11 }
  0x49   : > { %p869_p12 = scmp.ne.s32.totalorder %s1142_s8, %s868_s12  ;;  %s873_s17 = scalar_lea.hbm %s1267_s0, 256 }
  0x4a   : > { %p874_p13 = scmp.lt.u32.totalorder %s1142_s8, %s1267_s0  ;;  %p875_p6 = scmp.lt.u32.totalorder %s873_s17, %s868_s12 }
  0x4b   : > { %p871_p2 = pnand %p870_p0, %p869_p12  ;;  %p877_p3 = scmp.lt.u32.totalorder %s868_s12, %s1142_s8 }
  0x4c   : > { %p876_p10 = por %p875_p6, %p874_p13 }
  0x4d   : > { %p872_p1 = pneg %p871_p2 }
  0x4e   : > { %p878_p7 = por %p877_p3, %p876_p10 }
  0x50   : > { %p879_p9 = pnand %p878_p7, %p872_p1 }
  0x52   : > { %882 = shalt.err (!%p879_p9)
}
  0x53   : > { %s883_s30 = scalar_lea.vmem %s1144_s10, 128  ;;  %s974_s15 = smov [#allocation2]  }
  0x54   : > { %p884_p12 = scmp.ne.s32.totalorder %s1144_s10, %s883_s30  ;;  %s888_s16 = sshll.u32 %s974_s15, 4  ;;  %s889_s16 = int_to_ptr.vmem [resolvable:$false] %s888_s16 }
  0x55   : > { %s890_s9 = scalar_lea.vmem %s889_s16, 256  ;;  %p891_p4 = scmp.lt.s32.totalorder %s1144_s10, %s889_s16 }
  0x56   : > { %p886_p2 = pnand %p884_p12, %p870_p0  ;;  %p892_p13 = scmp.lt.s32.totalorder %s890_s9, %s883_s30 }
  0x58   : > { %p887_p5 = pneg %p886_p2  ;;  %p893_p6 = por %p892_p13, %p891_p4 }
  0x5a   : > { %p894_p10 = pnand %p893_p6, %p887_p5 }
  0x5c   : > { %897 = shalt.err (!%p894_p10)
}
  0x5d   : > { %758 = dma.hbm_to_vmem [thread:$0]  (!%p1146_p11), %s1142_s8, 128, %s1144_s10, %s209_s28  }
  0x5e   : > { %228 = sbr.rel (%p1049_p8) target bundleno = 611 (0x263), region = 40  ;;  %s1178_s12 = sand.u32 (!%p1049_p8), 1, %s960_s19  }
  0x5f   : > { %s574_s13 = sshll.u32 (!%p1049_p8), %s1178_s12, 3  ;;  %s231_s29 = scalar_lea.sflag (!%p1049_p8), [#allocation3], %s1178_s12 }
  0x60   : > { %s1184_s17 = scalar_lea.vmem (!%p1049_p8), [#allocation2], %s574_s13  ;;  %p1283_p4 = scmp.ne.s32.totalorder (!%p1049_p8), %s1276_s24, 0 }
  0x65   : > { %943 = dma.done.wait (%p1283_p4), %s231_s29, 128  }
  0x66   : > { %945 = vsyncadd (%p1283_p4), %s231_s29, 4294967168  ;;  %p1284_p5 = scmp.eq.s32.totalorder %s1030_s22, 0 }
  0x68   : > { %947 = dma.done.wait (%p1284_p5), [#allocation6], 4096   ;;  %p1285_p8 = pmov %p1284_p5 }
  0x69   : > { %v975_v0 = vmov 0.0|0.0   ;;  %vm976_vm0 = vmmov 0   ;;  %v977_v1 = vmov 0.0   ;;  %v270_v2 = vld [vmem:[#allocation5] sm:$0xff]  ;;  %v271_v3 = vld [vmem:[#allocation5 + $0x8] sm:$0xff]  ;;  %v272_v4 = vld [vmem:[#allocation5 + $0x10] sm:$0xff] }
  0x6a   : > { %949 = vsyncadd (%p1285_p8), [#allocation6], 4294963200  ;;  %688 = vmatprep.subr.bf16.mxu0 %v975_v0  ;;  %650 = vmatprep.mubr.msk.f32.mxu0 %vm976_vm0, %v977_v1  ;;  %v689_v5 = vpack.c.bf16 %v271_v3, %v270_v2  ;;  %v273_v6 = vld [vmem:[#allocation5 + $0x18] sm:$0xff]  ;;  %v274_v8 = vld [vmem:[#allocation5 + $0x20] sm:$0xff]  ;;  %s581_s11 = sshll.u32 %s1030_s22, 7  ;;  %s268_s28 = scalar_lea.vmem [#allocation8], %s574_s13 }
  0x6b   : > { %712 = vmatprep.subr.bf16.mxu1 %v975_v0  ;;  %685 = vmatprep.mubr.msk.f32.mxu1 %vm976_vm0, %v977_v1  ;;  %v692_v7 = vpack.c.bf16 %v273_v6, %v272_v4  ;;  %v275_v9 = vld [vmem:[#allocation5 + $0x28] sm:$0xff]  ;;  %v276_v11 = vld [vmem:[#allocation5 + $0x30] sm:$0xff]  ;;  %v277_v12 = vld [vmem:[#allocation5 + $0x38] sm:$0xff]  ;;  %s477_s7 = sshll.u32 %s268_s28, 4  ;;  %s1223_s15 = scalar_lea.hbm %s1272_s5, %s581_s11  ;;  %s1225_s7 = int_to_ptr.vmem [resolvable:$true] %s477_s7 }
  0x6c   : > { %690 = vmatpush3.bf16.msra.mxu0 %v689_v5  ;;  %v695_v10 = vpack.c.bf16 %v275_v9, %v274_v8  ;;  %v698_v13 = vpack.c.bf16 %v277_v12, %v276_v11  ;;  %v278_v14 = vld [vmem:[#allocation5 + $0x40] sm:$0xff]  ;;  %v279_v15 = vld [vmem:[#allocation5 + $0x48] sm:$0xff]  ;;  %v280_v17 = vld [vmem:[#allocation5 + $0x50] sm:$0xff]  ;;  %s464_s16 = scalar_lea.sflag [#allocation4], %s1178_s12  ;;  %s898_s9 = scalar_lea.vmem %s1225_s7, 128 }
  0x6d   : > { %691 = vmatprep.subr.bf16.mxu0 %v975_v0  ;;  %v701_v16 = vpack.c.bf16 %v279_v15, %v278_v14  ;;  %v281_v18 = vld [vmem:[#allocation5 + $0x58] sm:$0xff]  ;;  %v282_v20 = vld [vmem:[#allocation5 + $0x60] sm:$0xff]  ;;  %v283_v21 = vld [vmem:[#allocation5 + $0x68] sm:$0xff]  ;;  %p899_p11 = scmp.ne.s32.totalorder %s1225_s7, %s898_s9  ;;  %p1286_p0 = scmp.ne.s32.totalorder %s1281_s23, 0 }
  0x6e   : > { %v704_v19 = vpack.c.bf16 %v281_v18, %v280_v17  ;;  %v707_v22 = vpack.c.bf16 %v283_v21, %v282_v20  ;;  %v284_v23 = vld [vmem:[#allocation5 + $0x70] sm:$0xff]  ;;  %v285_v24 = vld [vmem:[#allocation5 + $0x78] sm:$0xff]  ;;  %v369_v27 = vld [vmem:[#allocation7] sm:$0xff]  ;;  %s978_s22 = smov [#allocation8]  }
  0x6f   : > { %v710_v25 = vpack.c.bf16 %v285_v24, %v284_v23  ;;  %v269_v26 = vld [vmem:[%s1184_s17] sm:$0xff]  ;;  %v370_v28 = vld [vmem:[#allocation7 + $0x8] sm:$0xff]  ;;  %v373_v33 = vld [vmem:[#allocation7 + $0x20] sm:$0xff]  ;;  %p900_p1 = pnand %p899_p11, %p1286_p0  ;;  %s902_s13 = sshll.u32 %s978_s22, 4  ;;  %s903_s13 = int_to_ptr.vmem [resolvable:$false] %s902_s13 }
  0x70   : > { %693 = vmatpush3.bf16.msra.mxu0 %v692_v7  ;;  %v713_v29 = vpack.c.bf16 %v370_v28, %v369_v27  ;;  %v371_v30 = vld [vmem:[#allocation7 + $0x10] sm:$0xff]  ;;  %v372_v31 = vld [vmem:[#allocation7 + $0x18] sm:$0xff]  ;;  %v374_v34 = vld [vmem:[#allocation7 + $0x28] sm:$0xff]  ;;  %s904_s29 = scalar_lea.vmem %s903_s13, 256  ;;  %p905_p7 = scmp.lt.s32.totalorder %s1225_s7, %s903_s13 }
  0x71   : > { %694 = vmatprep.subr.bf16.mxu0 %v975_v0  ;;  %v716_v32 = vpack.c.bf16 %v372_v31, %v371_v30  ;;  %v719_v35 = vpack.c.bf16 %v374_v34, %v373_v33  ;;  %v375_v36 = vld [vmem:[#allocation7 + $0x30] sm:$0xff]  ;;  %v376_v37 = vld [vmem:[#allocation7 + $0x38] sm:$0xff]  ;;  %v377_v39 = vld [vmem:[#allocation7 + $0x40] sm:$0xff]  ;;  %p901_p3 = pneg %p900_p1  ;;  %p906_p9 = scmp.lt.s32.totalorder %s904_s29, %s898_s9 }
  0x72   : > { %714 = vmatpush3.bf16.msra.mxu1 %v713_v29  ;;  %v722_v38 = vpack.c.bf16 %v376_v37, %v375_v36  ;;  %v378_v40 = vld [vmem:[#allocation7 + $0x48] sm:$0xff]  ;;  %v379_v42 = vld [vmem:[#allocation7 + $0x50] sm:$0xff]  ;;  %v380_v43 = vld [vmem:[#allocation7 + $0x58] sm:$0xff] }
  0x73   : > { %715 = vmatprep.subr.bf16.mxu1 %v975_v0  ;;  %v725_v41 = vpack.c.bf16 %v378_v40, %v377_v39  ;;  %v728_v44 = vpack.c.bf16 %v380_v43, %v379_v42  ;;  %v381_v45 = vld [vmem:[#allocation7 + $0x60] sm:$0xff]  ;;  %v382_v46 = vld [vmem:[#allocation7 + $0x68] sm:$0xff]  ;;  %v383_v48 = vld [vmem:[#allocation7 + $0x70] sm:$0xff]  ;;  %p907_p12 = por %p906_p9, %p905_p7 }
  0x74   : > { %696 = vmatpush3.bf16.msra.mxu0 %v695_v10  ;;  %v731_v47 = vpack.c.bf16 %v382_v46, %v381_v45  ;;  %v384_v49 = vld [vmem:[#allocation7 + $0x78] sm:$0xff]  ;;  %v578_v51 = vld [vmem:[%s1269_s2] ss:$0 sm:$0xff] }
  0x75   : > { %697 = vmatprep.subr.bf16.mxu0 %v975_v0  ;;  %v734_v50 = vpack.c.bf16 %v384_v49, %v383_v48  ;;  %v579_v61 = vld [vmem:[%s1271_s4] ss:$0 sm:$0xff]  ;;  %p908_p2 = pnand %p907_p12, %p901_p3 }
  0x76   : > { %717 = vmatpush3.bf16.msra.mxu1 %v716_v32 }
  0x77   : > { %718 = vmatprep.subr.bf16.mxu1 %v975_v0 }
  0x78   : > { %699 = vmatpush3.bf16.msra.mxu0 %v698_v13 }
  0x79   : > { %700 = vmatprep.subr.bf16.mxu0 %v975_v0 }
  0x7a   : > { %720 = vmatpush3.bf16.msra.mxu1 %v719_v35 }
  0x7b   : > { %721 = vmatprep.subr.bf16.mxu1 %v975_v0 }
  0x7c   : > { %702 = vmatpush3.bf16.msra.mxu0 %v701_v16 }
  0x7d   : > { %703 = vmatprep.subr.bf16.mxu0 %v975_v0 }
  0x7e   : > { %723 = vmatpush3.bf16.msra.mxu1 %v722_v38 }
  0x7f   : > { %724 = vmatprep.subr.bf16.mxu1 %v975_v0 }
  0x80   : > { %705 = vmatpush3.bf16.msra.mxu0 %v704_v19 }
  0x81   : > { %706 = vmatprep.subr.bf16.mxu0 %v975_v0 }
  0x82   : > { %726 = vmatpush3.bf16.msra.mxu1 %v725_v41 }
  0x83   : > { %727 = vmatprep.subr.bf16.mxu1 %v975_v0 }
  0x84   : > { %708 = vmatpush3.bf16.msra.mxu0 %v707_v22 }
  0x85   : > { %709 = vmatprep.subr.bf16.mxu0 %v975_v0 }
  0x86   : > { %729 = vmatpush3.bf16.msra.mxu1 %v728_v44 }
  0x87   : > { %730 = vmatprep.subr.bf16.mxu1 %v975_v0 }
  0x88   : > { %711 = vmatpush3.bf16.msra.mxu0 %v710_v25 }
  0x8a   : > { %732 = vmatpush3.bf16.msra.mxu1 %v731_v47 }
  0x8b   : > { %651 = vmatmul.mubr.f32.vlgmr.msra.gmra.mrb[0].mxu0 %v269_v26  ;;  %733 = vmatprep.subr.bf16.mxu1 %v975_v0 }
  0x8e   : > { %735 = vmatpush3.bf16.msra.mxu1 %v734_v50 }
 0x15e   : > { %v359_v52 = vpop.f32.mrb[0].mxu0 }
 0x15f   : > { %v360_v53 = vadd.f32 %v578_v51, %v359_v52  ;;  %v652_v54 = vpop.f32.mrb[1].mxu0 }
 0x161   : > { %v363_v55 = vsub.f32 0.0, %v360_v53 }
 0x163   : > { %v364_v56 = vmul.f32 1.442695, %v363_v55 }
 0x165   : > { %808 = vpow2.f32 %v364_v56 }
 0x16f   : > { %v809_v57 = vpop.eup %808 }
 0x170   : > { %v366_v58 = vadd.f32 1.0, %v809_v57 }
 0x172   : > { %810 = vrcp.f32 %v366_v58 }
 0x17c   : > { %v811_v59 = vpop.eup %810 }
 0x17d   : > { %v368_v60 = vmul.f32 %v811_v59, %v360_v53 }
 0x17f   : > { %686 = vmatmul.mubr.f32.vlgmr.msra.gmra.mrb[0].mxu1 %v368_v60 }
 0x252   : > { %v458_v62 = vpop.f32.mrb[0].mxu1 }
 0x253   : > { %v459_v63 = vadd.f32 %v579_v61, %v458_v62  ;;  %v687_v0 = vpop.f32.mrb[1].mxu1 }
 0x255   : > { %462 = vst [vmem:[%s268_s28] sm:$0xff] %v459_v63 }
 0x256   : > { %911 = shalt.err (!%p908_p2)
}
 0x257   : > { %s912_s12 = scalar_lea.hbm %s1223_s15, 128  ;;  %s916_s26 = scalar_lea.hbm %s1272_s5, 256 }
 0x258   : > { %p913_p13 = scmp.ne.s32.totalorder %s1223_s15, %s912_s12  ;;  %p917_p4 = scmp.lt.u32.totalorder %s1223_s15, %s1272_s5 }
 0x259   : > { %p918_p5 = scmp.lt.u32.totalorder %s916_s26, %s912_s12  ;;  %p920_p11 = scmp.lt.u32.totalorder %s912_s12, %s1223_s15 }
 0x25a   : > { %p914_p6 = pnand %p913_p13, %p1286_p0 }
 0x25b   : > { %p919_p8 = por %p918_p5, %p917_p4 }
 0x25c   : > { %p915_p10 = pneg %p914_p6 }
 0x25d   : > { %p921_p1 = por %p920_p11, %p919_p8 }
 0x25f   : > { %p922_p3 = pnand %p921_p1, %p915_p10 }
 0x261   : > { %925 = shalt.err (!%p922_p3)
}
 0x262   : > { %746 = dma.vmem_to_hbm [thread:$0]  (%p1286_p0), %s1225_s7, 128, %s1223_s15, %s464_s16  }
 0x263 PF: > { %s489_s11 = sand.u32 1, %s956_s18   ;;  %p1287_p7 = scmp.ne.s32.totalorder %s1277_s25, 0 }
 0x264   : > { %p1288_p9 = scmp.ge.s32.totalorder %s968_s21, 2  ;;  %s490_s28 = scalar_lea.sflag [#allocation4], %s489_s11 }
 0x266   : > { %p760_p12 = pnand %p1288_p9, %p1287_p7 }
 0x268   : > { %951 = dma.done.wait (!%p760_p12), %s490_s28, 128  }
 0x269   : > { %953 = vsyncadd (!%p760_p12), %s490_s28, 4294967168  ;;  %p19_p2 = scmp.ge.s32.totalorder %s1119_s14, 4   ;;  %s1289_s18 = smov %s960_s19 }
 0x26a   : > { %s1290_s19 = smov %s964_s20  ;;  %s1291_s20 = smov %s1135_s27 }
 0x26b   : > { %s1292_s21 = smov %s1119_s14  ;;  %21 = sbr.rel (!%p19_p2) target bundleno = 6 (0x6), region = 93 }
 0x272   :  { %495 = vsyncpa [#allocation3], 1 }
 0x273   :  { %497 = vsyncpa [#allocation3 + $0x1], 1 }
 0x274   :  { %498 = vsyncpa [#allocation6], 1 }
 0x275   :  { %499 = vsyncpa [#allocation4], 1 }
 0x276   :  { %501 = vsyncpa [#allocation4 + $0x1], 1 }

</bundles_post_ra>
